<compile_context>
chip_gen: v7x
topology: tpu7x:2x2x1
jax: 0.10.0
libtpu: 0.0.40
codegen_flags: <defaults>
</compile_context>

<pallas_src>
import functools

import jax
import jax.numpy as jnp
import numpy as np
from jax.experimental import pallas as pl
from jax.experimental.pallas import tpu as pltpu


def _normalize_kernel(w_ref, x_ref, o_ref, *, eps):
    # x_ref block: (Bn, C, T); w_ref block: (1, C, 1)
    x = x_ref[...].astype(jnp.float32)
    # Cross-channel sum of squares: sublane (XLU) reduce, keepdims for broadcast.
    sumsq = jnp.sum(x * x, axis=1, keepdims=True)            # (Bn, 1, T)
    inv = 1.0 / (jnp.sqrt(sumsq) + eps)                      # exact; keeps 1e-5 rtol
    w = w_ref[...].astype(jnp.float32)                       # (1, C, 1)
    o_ref[...] = (x * inv * w).astype(o_ref.dtype)


def _vmem_limit_bytes():
    """Generation-aware scoped-VMEM request (v5e/v6e: 128 MiB phys, v7x: 64 MiB)."""
    cap = 64 * 1024 * 1024  # conservative fallback = v7x physical VMEM per TC
    try:
        cap = int(pltpu.get_tpu_info().vmem_capacity_bytes)
    except Exception:
        pass
    # Request 3/4 of physical, capped; leaves headroom for compiler scratch.
    return min(int(0.75 * cap), 112 * 1024 * 1024)


def _pick_tiles(N, C, HW, itemsize, vmem_limit):
    """Choose (Bn, T): images packed per grid step and lane-tile width."""
    # Sublane padding of the channel axis: 8 rows for f32, 16 for bf16, 32 for int8.
    sub = 8 * max(1, 4 // itemsize)
    c_pad = ((C + sub - 1) // sub) * sub

    # VMEM bytes per block element: double-buffered in + out blocks plus ~3
    # f32-sized in-kernel temporaries (upcast, squares, scaled product).
    per_elem = 4 * itemsize + 3 * 4
    elems_cap = int(0.8 * vmem_limit) // per_elem
    # Also keep a single block <= 8 MiB of raw data (per-step wall stays small).
    elems_cap = min(elems_cap, (8 * 1024 * 1024) // itemsize)

    if HW <= 128:
        # Full extent (allowed when equal to the array dim).
        T = HW
    else:
        t_cap = max(128, (elems_cap // max(c_pad, 1)) // 128 * 128)
        t_cap = min(t_cap, ((HW + 127) // 128) * 128)
        # Prefer >= 8 total grid steps (>= 4 per v7x TensorCore) when the data is
        # big enough, so the pipeline can hide prologue/epilogue DMA.
        want_lane_steps = -(-8 // max(N, 1))
        if HW >= want_lane_steps * 512:
            t_cap = min(t_cap, max(512, (HW // want_lane_steps) // 128 * 128))
        if HW % 128 == 0:
            # Prefer an exact divisor: every store is a full unmasked lane-dense vst.
            T = 128
            for cand in range(t_cap, 127, -128):
                if HW % cand == 0:
                    T = cand
                    break
        else:
            # Non-aligned spatial: multiple-of-128 tile with a cdiv grid; only the
            # tail block uses masked partial stores.
            T = t_cap

    lane_steps = -(-HW // T)

    def step_bytes(bn):
        blk = bn * c_pad * T
        # 2x double-buffered input + 2x output blocks, f32 temps, padded weight tile.
        return 4 * blk * itemsize + 3 * blk * 4 + 2 * c_pad * 128 * 4

    # Pack several images per step when slabs are tiny, but keep >= 8 total steps.
    Bn = 1
    while (N % (Bn * 2) == 0
           and step_bytes(Bn * 2) <= int(0.8 * vmem_limit)
           and (N // (Bn * 2)) * lane_steps >= 8):
        Bn *= 2
    return Bn, T


def normalize(x, weight, eps=1e-10):
    """Cross-channel L2 normalize with per-channel scale. x: (N,C,H,W), weight: (C,)."""
    N, C, H, W = x.shape
    HW = H * W
    itemsize = jnp.dtype(x.dtype).itemsize
    vmem_limit = _vmem_limit_bytes()
    Bn, T = _pick_tiles(N, C, HW, itemsize, vmem_limit)

    x_flat = x.reshape(N, C, HW)
    w3 = weight.reshape(1, C, 1).astype(jnp.float32)

    kernel = functools.partial(_normalize_kernel, eps=float(eps))

    out = pl.pallas_call(
        kernel,
        out_shape=jax.ShapeDtypeStruct((N, C, HW), x.dtype),
        grid_spec=pltpu.PrefetchScalarGridSpec(
            num_scalar_prefetch=0,
            grid=(N // Bn, pl.cdiv(HW, T)),
            in_specs=[
                pl.BlockSpec((1, C, 1), lambda b, t: (0, 0, 0)),    # per-channel weight
                pl.BlockSpec((Bn, C, T), lambda b, t: (b, 0, t)),   # input slab
            ],
            out_specs=pl.BlockSpec((Bn, C, T), lambda b, t: (b, 0, t)),
        ),
        compiler_params=pltpu.CompilerParams(
            dimension_semantics=("parallel", "parallel"),
            vmem_limit_bytes=vmem_limit,
        ),
    )(w3, x_flat)

    return out.reshape(N, C, H, W)


def _normalize_reference(x, weight, eps=1e-10):
    """Pure-numpy reference of the Normalize module forward."""
    x = np.asarray(x, dtype=np.float32)
    w = np.asarray(weight, dtype=np.float32).reshape(1, -1, 1, 1)
    norm = np.sqrt((x * x).sum(axis=1, keepdims=True)) + eps
    return x / norm * w


if __name__ == "__main__":
    key = jax.random.PRNGKey(0)
    N, C, H, W = 2, 4, 16, 16
    x = jax.random.normal(key, (N, C, H, W), dtype=jnp.float32)

    scale = 20.0          # Normalize(n_channels=C, scale=20.0): weight filled with scale
    eps = 1e-10
    weight = jnp.full((C,), scale, dtype=jnp.float32)

    y = normalize(x, weight, eps=eps)
    y = jax.block_until_ready(y)

    y_ref = _normalize_reference(np.asarray(x), np.asarray(weight), eps)
    np.testing.assert_allclose(np.asarray(y), y_ref, rtol=1e-5, atol=1e-5)

    print("KERNEL_OK")
</pallas_src>

<mosaic_0001>
module attributes {stable_mosaic.version = 11 : i64} {
  func.func @_normalize_kernel(%arg0: i32, %arg1: i32, %arg2: memref<1x4x1xf32, #tpu.memory_space<vmem>>, %arg3: memref<1x4x256xf32, #tpu.memory_space<vmem>>, %arg4: memref<1x4x256xf32, #tpu.memory_space<vmem>>) attributes {dimension_semantics = [#tpu.dimension_semantics<parallel>, #tpu.dimension_semantics<parallel>], iteration_bounds = array<i64: 2, 1>, scalar_prefetch = 0 : i64, scratch_operands = 0 : i64, tpu.core_type = #tpu.core_type<tc>, window_params = [{pipeline_mode = #tpu.pipeline_mode<synchronous>, transform_indices = @transform_0, window_bounds = array<i64: 1, 4, 1>}, {transform_indices = @transform_1, window_bounds = array<i64: 1, 4, 256>}, {transform_indices = @transform_2, window_bounds = array<i64: 1, 4, 256>}]} {
    %c0 = arith.constant 0 : index
    %c0_0 = arith.constant 0 : index
    %c0_1 = arith.constant 0 : index
    %0 = vector.load %arg3[%c0, %c0_0, %c0_1] : memref<1x4x256xf32, #tpu.memory_space<vmem>>, vector<1x4x256xf32>
    %1 = arith.mulf %0, %0 : vector<1x4x256xf32>
    %cst = arith.constant dense<0.000000e+00> : vector<1x256xf32>
    %2 = vector.multi_reduction <add>, %1, %cst [1] : vector<1x4x256xf32> to vector<1x256xf32>
    %3 = vector.shape_cast %2 : vector<1x256xf32> to vector<1x1x256xf32>
    %4 = math.sqrt %3 : vector<1x1x256xf32>
    %cst_2 = arith.constant 1.000000e-10 : f32
    %5 = vector.broadcast %cst_2 : f32 to vector<1x1x256xf32>
    %6 = arith.addf %4, %5 : vector<1x1x256xf32>
    %cst_3 = arith.constant 1.000000e+00 : f32
    %7 = vector.broadcast %cst_3 : f32 to vector<1x1x256xf32>
    %8 = arith.divf %7, %6 : vector<1x1x256xf32>
    %c0_4 = arith.constant 0 : index
    %c0_5 = arith.constant 0 : index
    %c0_6 = arith.constant 0 : index
    %9 = vector.load %arg2[%c0_4, %c0_5, %c0_6] : memref<1x4x1xf32, #tpu.memory_space<vmem>>, vector<1x4x1xf32>
    %10 = vector.broadcast %8 : vector<1x1x256xf32> to vector<1x4x256xf32>
    %11 = arith.mulf %0, %10 : vector<1x4x256xf32>
    %12 = vector.broadcast %9 : vector<1x4x1xf32> to vector<1x4x256xf32>
    %13 = arith.mulf %11, %12 : vector<1x4x256xf32>
    %c0_7 = arith.constant 0 : index
    %c0_8 = arith.constant 0 : index
    %c0_9 = arith.constant 0 : index
    %14 = vector.load %arg4[%c0_7, %c0_8, %c0_9] : memref<1x4x256xf32, #tpu.memory_space<vmem>>, vector<1x4x256xf32>
    tpu.vector_store %arg4[%c0_7, %c0_8, %c0_9], %13 {strides = array<i32>} : memref<1x4x256xf32, #tpu.memory_space<vmem>>, vector<1x4x256xf32>,
    return
  }
  func.func @transform_0(%arg0: i32, %arg1: i32) -> (i32, i32, i32) {
    %c0_i32 = arith.constant 0 : i32
    %c0_i32_0 = arith.constant 0 : i32
    %c0_i32_1 = arith.constant 0 : i32
    %c0_i32_2 = arith.constant 0 : i32
    return %c0_i32, %c0_i32_0, %c0_i32_1 : i32, i32, i32
  }
  func.func @transform_1(%arg0: i32, %arg1: i32) -> (i32, i32, i32) {
    %c0_i32 = arith.constant 0 : i32
    %c0_i32_0 = arith.constant 0 : i32
    return %arg0, %c0_i32, %arg1 : i32, i32, i32
  }
  func.func @transform_2(%arg0: i32, %arg1: i32) -> (i32, i32, i32) {
    %c0_i32 = arith.constant 0 : i32
    %c0_i32_0 = arith.constant 0 : i32
    return %arg0, %c0_i32, %arg1 : i32, i32, i32
  }
}

</mosaic_0001>

<bundles_post_ra>
// kernel: tpu_custom_call.1
= control target key start
LH: loop header
LB: loop body
LE: loop exit
PB: predicated region body
PF: predicated region fallthrough
CT: control target
= control target key end

     0   :  { %7 = vsyncpa [#allocation3], 0  ;;  %s743_s0 = inlined_call_operand.vmem [shape: f32[1,4,1], index: 0, kind: input, shape index: {}]   ;;  %s744_s1 = inlined_call_operand.hbm [shape: f32[2,4,256], index: 1, kind: input, shape index: {}]   ;;  %s745_s2 = inlined_call_operand.hbm [shape: f32[2,4,256], index: 2, kind: output, shape index: {}]  }
   0x1   :  { %9 = vsyncpa [#allocation3 + $0x1], 0 }
   0x2   :  { %10 = vsyncpa [#allocation4], 0 }
   0x3   :  { %12 = vsyncpa [#allocation4 + $0x1], 0  ;;  %s564_s9 = smov 0   ;;  %s566_s10 = smov 0  }
   0x4   :  { %s568_s11 = smov 0   ;;  %s570_s12 = smov 0  }
   0x5   :  { %s572_s13 = smov 0   ;;  %s574_s14 = smov 0  }
   0x6 LB: > { %s341_s15 = sadd.s32 4294967295, %s543_s14   ;;  %s342_s16 = sadd.s32 4294967294, %s543_s14   ;;  %s543_s14 = sphi %s574_s14, %s18_s14   ;;  %s539_s13 = sphi %s572_s13, %s761_s13   ;;  %s535_s12 = sphi %s570_s12, %s760_s12   ;;  %s531_s11 = sphi %s568_s11, %s759_s11   ;;  %s527_s10 = sphi %s566_s10, %s758_s10   ;;  %s523_s9 = sphi %s564_s9, %s757_s9  }
   0x7   : > { %s30_s17 = sadd.s32 1, %s539_s13  ;;  %s60_s18 = sadd.s32 1, %s531_s11 }
   0x8   : > { %p32_p0 = scmp.ge.s32.totalorder %s30_s17, 2  ;;  %p67_p1 = scmp.ne.s32.totalorder %s531_s11, %s527_s10 }
   0x9   : > { %p68_p2 = scmp.eq.s32.totalorder %s543_s14, 0  ;;  %p73_p3 = scmp.ne.s32.totalorder %s527_s10, %s523_s9 }
   0xa   : > { %s763_s17 = smov (%p32_p0, %s30_s17), 0  ;;  %p74_p5 = scmp.eq.s32.totalorder %s341_s15, 0 }
   0xb   : > { %p605_p4 = por %p68_p2, %p67_p1  ;;  %s55_s20 = ssub.s32 %s539_s13, %s763_s17 }
   0xc   : > { %p99_p6 = scmp.eq.s32.totalorder %s341_s15, 1  ;;  %p58_p7 = scmp.eq.s32.totalorder %s55_s20, 0 }
   0xd   : > { %p611_p8 = por %p74_p5, %p73_p3  ;;  %p105_p10 = scmp.eq.s32.totalorder %s342_s16, 1 }
   0xe   : > { %p615_p9 = por %p99_p6, %p67_p1  ;;  %p370_p13 = scmp.lt.s32.totalorder %s543_s14, 2 }
   0xf   : > { %s620_s23 = scalar_select %p58_p7, %s531_s11, %s60_s18  }
  0x10   : > { %s749_s22 = scalar_select %p615_p9, 1, 0 }
  0x11   : > { %p622_p11 = por %p105_p10, %p73_p3  ;;  %s128_s25 = sand.u32 1, %s531_s11  }
  0x12   : > { %s345_s26 = sshll.u32 %s128_s25, 3  ;;  %s356_s27 = sshll.u32 %s539_s13, 7 }
  0x13   : > { %s750_s24 = scalar_select %p622_p11, 1, 0 }
  0x14   : > { %s633_s30 = scalar_lea.hbm %s744_s1, %s356_s27  ;;  %s132_s3 = scalar_lea.vmem [#allocation2], %s345_s26 }
  0x15   : > { %s142_s4 = sshll.u32 %s132_s3, 4  ;;  %p639_p0 = pnand %p370_p13, %p605_p4  ;;  %s635_s4 = int_to_ptr.vmem [resolvable:$true] %s142_s4 }
  0x16   : > { %s129_s6 = scalar_lea.sflag [#allocation3], %s128_s25  ;;  %s431_s7 = scalar_lea.hbm %s633_s30, 128 }
  0x17   : > { %p432_p3 = scmp.ne.s32.totalorder %s633_s30, %s431_s7  ;;  %p433_p5 = pneg %p639_p0 }
  0x18   : > { %s436_s16 = scalar_lea.hbm %s744_s1, 256  ;;  %p437_p4 = scmp.lt.u32.totalorder %s633_s30, %s744_s1 }
  0x19   : > { %p434_p6 = pnand %p433_p5, %p432_p3  ;;  %p438_p10 = scmp.lt.u32.totalorder %s436_s16, %s431_s7 }
  0x1a   : > { %p440_p12 = scmp.lt.u32.totalorder %s431_s7, %s633_s30 }
  0x1b   : > { %p435_p7 = pneg %p434_p6  ;;  %p439_p13 = por %p438_p10, %p437_p4 }
  0x1d   : > { %p441_p1 = por %p440_p12, %p439_p13 }
  0x1f   : > { %p442_p2 = pnand %p441_p1, %p435_p7 }
  0x21   : > { %445 = shalt.err (!%p442_p2)
}
  0x22   : > { %s446_s20 = scalar_lea.vmem %s635_s4, 128  ;;  %s545_s25 = smov [#allocation2]  }
  0x23   : > { %p447_p3 = scmp.ne.s32.totalorder %s635_s4, %s446_s20  ;;  %s451_s26 = sshll.u32 %s545_s25, 4  ;;  %s452_s26 = int_to_ptr.vmem [resolvable:$false] %s451_s26 }
  0x24   : > { %s453_s27 = scalar_lea.vmem %s452_s26, 256  ;;  %p454_p9 = scmp.lt.s32.totalorder %s635_s4, %s452_s26 }
  0x25   : > { %p449_p6 = pnand %p447_p3, %p433_p5  ;;  %p455_p4 = scmp.lt.s32.totalorder %s453_s27, %s446_s20 }
  0x27   : > { %p450_p11 = pneg %p449_p6  ;;  %p456_p10 = por %p455_p4, %p454_p9 }
  0x29   : > { %p457_p12 = pnand %p456_p10, %p450_p11 }
  0x2b   : > { %460 = shalt.err (!%p457_p12)
}
  0x2c   : > { %365 = dma.hbm_to_vmem [thread:$0]  (!%p639_p0), %s633_s30, 128, %s635_s4, %s129_s6  }
  0x2d   : > { %p752_p1 = scmp.lt.s32.totalorder %s543_s14, 3  ;;  %p753_p2 = scmp.ge.s32.totalorder %s543_s14, 1 }
  0x2f   : > { %p148_p5 = pnand %p753_p2, %p752_p1 }
  0x30   : > { %s675_s28 = sand.u32 (!%p148_p5), 1, %s527_s10  }
  0x31   : > { %151 = sbr.rel (%p148_p5) target bundleno = 205 (0xcd), region = 28  ;;  %s349_s29 = sshll.u32 (!%p148_p5), %s675_s28, 3 }
  0x32   : > { %s154_s3 = scalar_lea.sflag (!%p148_p5), [#allocation3], %s675_s28  ;;  %s157_s5 = scalar_lea.vmem (!%p148_p5), [#allocation2], %s349_s29 }
  0x38   : > { %514 = dma.done.wait (%p611_p8), %s154_s3, 128  }
  0x39   : > { %516 = vsyncadd (%p611_p8), %s154_s3, 4294967168  ;;  %v546_v0 = vmov 0   ;;  %v220_v1 = vld [vmem:[%s743_s0] sm:$0xf]  ;;  %vm185_vm0 = vcmask 1043456   ;;  %v233_v33 = vlaneseq  ;;  %s357_s21 = sshll.u32 %s535_s12, 7 }
  0x3a   : > { %422 = vset.pattern.permute.xlu0 %v546_v0  ;;  %v180_v2 = vld [vmem:[%s157_s5] sm:$0xff]  ;;  %v547_v31 = vmov 839922192   ;;  %s177_s6 = scalar_lea.vmem [#allocation5], %s349_s29  ;;  %s694_s16 = scalar_lea.hbm %s745_s2, %s357_s21 }
  0x3b   : > { %228 = vperm.xlu0 %422, %v220_v1   ;;  %v181_v3 = vmul.f32 %v180_v2, %v180_v2  ;;  %v231_v32 = vunpack.c.l.s4 %v547_v31  ;;  %v234_v37 = vshrl.u32 %v233_v33, 7  ;;  %s257_s7 = sshll.u32 %s177_s6, 4  ;;  %s241_s18 = scalar_lea.sflag [#allocation4], %s675_s28  ;;  %s696_s7 = int_to_ptr.vmem [resolvable:$true] %s257_s7 }
  0x3c   : > { %s461_s19 = scalar_lea.vmem %s696_s7, 128  ;;  %p754_p9 = scmp.ne.s32.totalorder %s749_s22, 0 }
  0x3d   : > { %v183_v4 = vcombine.high %v181_v3, %v181_v3  ;;  %v186_v5 = vsel %vm185_vm0, %v181_v3, 0.0  ;;  %v232_v36 = vunpack.c.0.s8 %v231_v32  ;;  %p462_p8 = scmp.ne.s32.totalorder %s696_s7, %s461_s19  ;;  %s548_s12 = smov [#allocation5]  }
  0x3e   : > { %v187_v7 = vrot.slane %v186_v5, 4  ;;  %s465_s20 = sshll.u32 %s548_s12, 4  ;;  %s466_s20 = int_to_ptr.vmem [resolvable:$false] %s465_s20 }
  0x3f   : > { %v193_v6 = vsel %vm185_vm0, %v183_v4, 0.0  ;;  %v235_v39 = vsub.s32 %v232_v36, %v234_v37  ;;  %p463_p11 = pnand %p462_p8, %p754_p9  ;;  %s467_s25 = scalar_lea.vmem %s466_s20, 256 }
  0x40   : > { %v194_v8 = vrot.slane %v193_v6, 4  ;;  %v188_v9 = vadd.f32 %v187_v7, %v186_v5  ;;  %p468_p7 = scmp.lt.s32.totalorder %s696_s7, %s466_s20  ;;  %p469_p13 = scmp.lt.s32.totalorder %s467_s25, %s461_s19 }
  0x41   : > { %p464_p0 = pneg %p463_p11 }
  0x42   : > { %v195_v10 = vadd.f32 %v194_v8, %v193_v6  ;;  %v189_v11 = vrot.slane %v188_v9, 2  ;;  %p470_p3 = por %p469_p13, %p468_p7 }
  0x44   : > { %v196_v12 = vrot.slane %v195_v10, 2  ;;  %v190_v13 = vadd.f32 %v189_v11, %v188_v9  ;;  %p471_p6 = pnand %p470_p3, %p464_p0 }
  0x46   : > { %v197_v14 = vadd.f32 %v196_v12, %v195_v10  ;;  %v191_v15 = vrot.slane %v190_v13, 1 }
  0x48   : > { %v198_v16 = vrot.slane %v197_v14, 1  ;;  %v192_v17 = vadd.f32 %v191_v15, %v190_v13 }
  0x4a   : > { %v199_v18 = vadd.f32 %v198_v16, %v197_v14  ;;  %423 = vrsqrt.f32 %v192_v17  ;;  %vm202_vm1 = vcmp.eq.f32.partialorder %v192_v17, inf  ;;  %v205_v23 = vand.u32 2147483648, %v192_v17 }
  0x4b   : > { %vm204_vm3 = vcmp.eq.f32.partialorder %v192_v17, 0.0 }
  0x4c   : > { %425 = vrsqrt.f32 %v199_v18  ;;  %vm209_vm2 = vcmp.eq.f32.partialorder %v199_v18, inf  ;;  %v212_v25 = vand.u32 2147483648, %v199_v18  ;;  %vm211_vm4 = vcmp.eq.f32.partialorder %v199_v18, 0.0 }
  0x54   : > { %v424_v19 = vpop.eup %423 }
  0x55   : > { %v201_v21 = vmul.f32 %v424_v19, %v192_v17 }
  0x56   : > { %v426_v20 = vpop.eup %425 }
  0x57   : > { %v208_v22 = vmul.f32 %v426_v20, %v199_v18  ;;  %v203_v24 = vsel %vm202_vm1, %v192_v17, %v201_v21 }
  0x58   : > { %v206_v27 = vsel %vm204_vm3, %v205_v23, %v203_v24 }
  0x59   : > { %v210_v26 = vsel %vm209_vm2, %v199_v18, %v208_v22  ;;  %v214_v29 = vadd.f32 1e-10, %v206_v27 }
  0x5a   : > { %v213_v28 = vsel %vm211_vm4, %v212_v25, %v210_v26 }
  0x5b   : > { %v215_v30 = vadd.f32 1e-10, %v213_v28  ;;  %427 = vrcp.f32 %v214_v29 }
  0x5d   : > { %429 = vrcp.f32 %v215_v30 }
  0x65   : > { %v428_v34 = vpop.eup %427 }
  0x67   : > { %v430_v35 = vpop.eup %429 }
  0x68   : > { %v223_v38 = vcombine.low %v428_v34, %v430_v35 }
  0x6a   : > { %v225_v40 = vmul.f32 %v223_v38, %v180_v2 }
  0xba   : > { %v229_v41 = vpop.permute.xlu0 %228 }
  0xbb   : > { %v236_v42 = vrot.slane %v229_v41, %v235_v39 }
  0xbd   : > { %v238_v43 = vmul.f32 %v236_v42, %v225_v40 }
  0xbf   : > { %239 = vst [vmem:[%s177_s6] sm:$0xff] %v238_v43 }
  0xc0   : > { %474 = shalt.err (!%p471_p6)
}
  0xc1   : > { %s475_s26 = scalar_lea.hbm %s694_s16, 128  ;;  %s479_s29 = scalar_lea.hbm %s745_s2, 256 }
  0xc2   : > { %p476_p4 = scmp.ne.s32.totalorder %s694_s16, %s475_s26  ;;  %p480_p1 = scmp.lt.u32.totalorder %s694_s16, %s745_s2 }
  0xc3   : > { %p481_p2 = scmp.lt.u32.totalorder %s479_s29, %s475_s26  ;;  %p483_p8 = scmp.lt.u32.totalorder %s475_s26, %s694_s16 }
  0xc4   : > { %p477_p10 = pnand %p476_p4, %p754_p9 }
  0xc5   : > { %p482_p5 = por %p481_p2, %p480_p1 }
  0xc6   : > { %p478_p12 = pneg %p477_p10 }
  0xc7   : > { %p484_p11 = por %p483_p8, %p482_p5 }
  0xc9   : > { %p485_p0 = pnand %p484_p11, %p478_p12 }
  0xcb   : > { %488 = shalt.err (!%p485_p0)
}
  0xcc   : > { %360 = dma.vmem_to_hbm [thread:$0]  (%p754_p9), %s696_s7, 128, %s694_s16, %s241_s18  }
  0xcd PF: > { %s269_s30 = sand.u32 1, %s523_s9   ;;  %p755_p7 = scmp.ne.s32.totalorder %s750_s24, 0 }
  0xce   : > { %p756_p13 = scmp.ge.s32.totalorder %s543_s14, 2  ;;  %s270_s4 = scalar_lea.sflag [#allocation4], %s269_s30 }
  0xd0   : > { %p367_p3 = pnand %p756_p13, %p755_p7 }
  0xd2   : > { %518 = dma.done.wait (!%p367_p3), %s270_s4, 128  }
  0xd3   : > { %520 = vsyncadd (!%p367_p3), %s270_s4, 4294967168  ;;  %s18_s14 = sadd.s32 1, %s543_s14   ;;  %s757_s9 = smov %s527_s10 }
  0xd4   : > { %p15_p6 = scmp.ge.s32.totalorder %s18_s14, 4   ;;  %s758_s10 = smov %s531_s11 }
  0xd5   : > { %s759_s11 = smov %s620_s23  ;;  %s760_s12 = smov %s539_s13 }
  0xd6   : > { %s761_s13 = smov %s763_s17  ;;  %17 = sbr.rel (!%p15_p6) target bundleno = 6 (0x6), region = 73 }
  0xdd   :  { %275 = vsyncpa [#allocation3], 1 }
  0xde   :  { %277 = vsyncpa [#allocation3 + $0x1], 1 }
  0xdf   :  { %278 = vsyncpa [#allocation4], 1 }
  0xe0   :  { %280 = vsyncpa [#allocation4 + $0x1], 1 }

</bundles_post_ra>
